<compile_context>
chip_gen: v5e
topology: v5e:2x2
jax: 0.10.0
libtpu: 0.0.40
codegen_flags: <defaults>
</compile_context>

<pallas_src>
import jax
import jax.numpy as jnp
from jax.experimental import pallas as pl
from jax.experimental.pallas import tpu as pltpu


def _multi_kernel(a_ref, b_ref, o_ref):
    # Pure scalar-path multiply: SMEM load -> scalar mul -> SMEM store.
    o_ref[0] = a_ref[0] * b_ref[0]


def multi_forward(a: jax.Array, b: jax.Array) -> jax.Array:
    """Computes a * b (both shape (1,), float32) via a Pallas TPU kernel.

    Returns a shape-(1,) float32 array, matching torch's `_a * _b` result.
    """
    return pl.pallas_call(
        _multi_kernel,
        out_shape=jax.ShapeDtypeStruct((1,), jnp.float32),
        in_specs=[
            pl.BlockSpec(memory_space=pltpu.MemorySpace.SMEM),
            pl.BlockSpec(memory_space=pltpu.MemorySpace.SMEM),
        ],
        out_specs=pl.BlockSpec(memory_space=pltpu.MemorySpace.SMEM),
    )(a, b)


if __name__ == "__main__":
    # Deterministic parameter initialization matching the module's __init__:
    #   self._a = torch.Tensor([0.1]); self._b = torch.Tensor([0.5])
    # (PRNGKey(0) is created per the harness convention, but the module uses
    #  fixed constants, not random weights.)
    key = jax.random.PRNGKey(0)
    del key

    a = jnp.array([0.1], dtype=jnp.float32)
    b = jnp.array([0.5], dtype=jnp.float32)

    result = multi_forward(a, b)
    result = jax.block_until_ready(result)

    expected = a * b
    assert result.shape == (1,), result.shape
    assert jnp.allclose(result, expected, rtol=1e-6, atol=1e-7), (result, expected)

    print("KERNEL_OK")
</pallas_src>

<mosaic_0001>
module attributes {stable_mosaic.version = 11 : i64} {
  func.func @_multi_kernel(%arg0: memref<1xf32, #tpu.memory_space<smem>>, %arg1: memref<1xf32, #tpu.memory_space<smem>>, %arg2: memref<1xf32, #tpu.memory_space<smem>>) attributes {dimension_semantics = [], scalar_prefetch = 0 : i64, scratch_operands = 0 : i64, tpu.core_type = #tpu.core_type<tc>} {
    %c0 = arith.constant 0 : index
    %0 = memref.load %arg0[%c0] : memref<1xf32, #tpu.memory_space<smem>>
    %c0_0 = arith.constant 0 : index
    %1 = memref.load %arg1[%c0_0] : memref<1xf32, #tpu.memory_space<smem>>
    %2 = arith.mulf %0, %1 : f32
    %c0_1 = arith.constant 0 : index
    %3 = memref.load %arg2[%c0_1] : memref<1xf32, #tpu.memory_space<smem>>
    memref.store %2, %arg2[%c0_1] : memref<1xf32, #tpu.memory_space<smem>>
    return
  }
}

</mosaic_0001>

<bundles_post_ra>
// kernel: tpu_custom_call.1
= control target key start
LH: loop header
LB: loop body
LE: loop exit
PB: predicated region body
PF: predicated region fallthrough
CT: control target
= control target key end

     0   :  { %9 = vsyncpa [#allocation5], 0  ;;  %s49_s17 = smov [#allocation4]   ;;  %s74_s0 = inlined_call_operand.<no memory space> [shape: f32[1], index: 0, kind: input, shape index: {}]   ;;  %s75_s1 = inlined_call_operand.<no memory space> [shape: f32[1], index: 1, kind: input, shape index: {}]   ;;  %s76_s2 = inlined_call_operand.hbm [shape: f32[1], index: 2, kind: output, shape index: {}]  }
   0x1   :  { %s16_s13 = smul.f32 %s75_s1, %s74_s0  ;;  %s24_s16 = sshll.u32 %s76_s2, 4  ;;  %s25_s16 = int_to_ptr.hbm [resolvable:$true] %s24_s16 }
   0x3   :  { %18 = sst [smem:[#allocation4]] %s16_s13 }
   0x4   :  { %27 = dma.smem_to_hbm %s49_s17, 16, %s25_s16, [#allocation5]  }
   0x5   :  { %47 = dma.done.wait [#allocation5], 16  }
   0x6   :  { %48 = vsyncadd [#allocation5], 4294967280 }
   0x7   :  { %32 = sfence }
   0x8   :  { %33 = vsyncpa [#allocation5], 1 }

</bundles_post_ra>
